<compile_context>
chip_gen: v7x
topology: tpu7x:2x2x1
jax: 0.10.0
libtpu: 0.0.40
codegen_flags: <defaults>
</compile_context>

<pallas_src>
import functools

import jax
import jax.numpy as jnp
from jax.experimental import pallas as pl
from jax.experimental.pallas import tpu as pltpu


def _round_up(x, m):
    return (x + m - 1) // m * m


def _chip_generation():
    """Best-effort TPU generation (5, 6, 7, ...) from the device kind string."""
    try:
        kind = jax.devices()[0].device_kind.lower()
    except Exception:
        return 6
    for g in (7, 6, 5, 4, 3, 2):
        if str(g) in kind:
            return g
    return 6


def _vmem_capacity_bytes(gen):
    """Physical per-TensorCore VMEM, from the runtime when available."""
    try:
        cap = int(pltpu.get_tpu_info().vmem_capacity_bytes)
    except Exception:
        cap = 0
    if cap <= 0:
        cap = {7: 64, 6: 128, 5: 128, 4: 128}.get(gen, 16) * 1024 * 1024
    if gen >= 7:  # v7x VMEM is per-TC (64 MiB); never assume more per core.
        cap = min(cap, 64 * 1024 * 1024)
    return cap


def _gather_kernel(idx_ref, emb_ref, out_ref, acc_ref, *, k_slice, n_k_slices):
    """One grid step gathers a (TN, Dp) chunk.

    idx_ref: (TN, 1) int32 chunk of (clamped) token indices.
    emb_ref: (Kp, Dp) embedding table, resident in VMEM (constant block, Buffered(1)).
    out_ref: (TN, Dp) gathered rows for this chunk (lane-dense store).
    acc_ref: (TN, Dp) float32 VMEM accumulator scratch.
    """
    tn = idx_ref.shape[0]
    idx = idx_ref[...]                       # hoisted: loaded once per chunk
    acc_ref[...] = jnp.zeros_like(acc_ref)

    def accum(k0):
        # One-hot slice for codes [k0, k0 + k_slice): bounded (TN, k_slice) working set.
        codes = k0 + jax.lax.broadcasted_iota(jnp.int32, (tn, k_slice), 1)
        one_hot = (idx == codes).astype(emb_ref.dtype)
        # Row-select on the MXU: (TN, k_slice) @ (k_slice, Dp), f32 accumulation.
        # TODO(synk): serve a bf16 table (full bf16 MXU rate, 2x packed one-hot) if the
        # model tolerates it; kept strict f32 here to match the torch module exactly.
        acc_ref[...] += jnp.dot(
            one_hot, emb_ref[pl.ds(k0, k_slice), :],
            preferred_element_type=jnp.float32)

    if n_k_slices == 1:
        accum(0)
    else:
        def step(kk, carry):
            accum(pl.multiple_of(kk * k_slice, k_slice))
            return carry
        jax.lax.fori_loop(0, n_k_slices, step, 0, unroll=(n_k_slices <= 8))

    out_ref[...] = acc_ref[...].astype(out_ref.dtype)


def embedding_lookup(embedding, indices, *, max_chunk=512):
    """Pallas embedding gather: embedding[indices] (torch nn.Embedding forward).

    embedding: (K, D) float32 codebook.
    indices:   any int shape; negatives normalized torch-style, out-of-range clamped.
    returns:   indices.shape + (D,), embedding.dtype.
    """
    K, D = embedding.shape
    dtype = embedding.dtype
    itemsize = jnp.dtype(dtype).itemsize
    orig_shape = indices.shape

    flat = indices.reshape(-1).astype(jnp.int32)
    flat = jnp.where(flat < 0, flat + K, flat)
    # NOTE: torch raises on out-of-range indices; we clamp so bad indices can never read
    # out of bounds (they silently select row 0 / K-1 instead of raising).
    flat = jnp.clip(flat, 0, K - 1)
    N = int(flat.shape[0])
    if N == 0:
        return jnp.zeros(orig_shape + (D,), dtype)

    gen = _chip_generation()
    capacity = _vmem_capacity_bytes(gen)
    vmem_budget = int((capacity - (6 << 20)) * 2 // 3)

    # Lane-dense output: pad D to a multiple of 128 (unmasked vst on the writeback path).
    Dp = _round_up(D, 128)
    # 256-wide K slices keep the 2x256x256 MXU (v6e/v7x) fully fed; tiny codebooks use a
    # single full-width slice.
    if K <= 256:
        k_slice = Kp = _round_up(K, 8)
    else:
        k_slice = 256
        Kp = _round_up(K, k_slice)
    n_k_slices = Kp // k_slice

    # The one-hot MXU gather costs 2*K*Dp flops per token vs O(Dp) useful bytes, so gate
    # it on K per generation (v5e MXU is ~4.7x slower than v6e/v7x).
    k_matmul_max = 1024 if gen <= 5 else 4096

    def footprint(tn):
        return (Kp * Dp * itemsize              # resident table, single buffer (Buffered(1))
                + 2 * tn * 128 * 4              # (tn,1) i32 idx tiles (lane-padded), 2 buffers
                + 2 * tn * Dp * itemsize        # (tn,Dp) output tiles, 2 buffers
                + tn * Dp * 4                   # f32 accumulator scratch
                + 2 * tn * k_slice * 4)         # one-hot slice working set (mask + f32 operand)

    if Kp > k_matmul_max or footprint(8) > vmem_budget:
        # TODO(synk): scalar-prefetch (indices in SMEM) / DMA row-gather kernel, O(N*D),
        # for very large codebooks; until then fall back to the XLA gather.
        return jnp.take(embedding, flat, axis=0).reshape(orig_shape + (D,))

    # Token-chunk size: multiple of 256 (MXU M dim) when large, multiple of 8 otherwise;
    # shrink until the whole working set fits the per-generation VMEM budget.
    tn0 = min(max_chunk, N)
    tn = min(max_chunk, _round_up(tn0, 256)) if tn0 >= 256 else _round_up(tn0, 8)
    while tn > 8 and footprint(tn) > vmem_budget:
        tn = tn - 256 if tn > 256 else max(8, _round_up(tn // 2, 8))

    n_chunks = pl.cdiv(N, tn)
    n_pad = n_chunks * tn

    idx2d = jnp.pad(flat, (0, n_pad - N)).reshape(n_pad, 1)
    emb_p = embedding
    if Kp != K or Dp != D:
        emb_p = jnp.pad(embedding, ((0, Kp - K), (0, Dp - D)))

    # Explicit scoped-VMEM limit from the real footprint + headroom (defaults are only
    # 16/32/32 MiB on v5e/v6e/v7x and do not hold uniformly across generations).
    vmem_limit = min(capacity, max(32 << 20, int(footprint(tn) * 1.5) + (6 << 20)))

    cost = pl.CostEstimate(
        flops=2 * n_pad * Kp * Dp,              # honest MXU work of the one-hot gather
        transcendentals=0,
        bytes_accessed=n_pad * 4 + Kp * Dp * itemsize + n_pad * Dp * itemsize,
    )

    kernel = functools.partial(_gather_kernel, k_slice=k_slice, n_k_slices=n_k_slices)

    out = pl.pallas_call(
        kernel,
        out_shape=jax.ShapeDtypeStruct((n_pad, Dp), dtype),
        grid_spec=pltpu.PrefetchScalarGridSpec(
            num_scalar_prefetch=0,
            grid=(n_chunks,),
            in_specs=[
                # Per-chunk indices.
                pl.BlockSpec((tn, 1), lambda i: (i, 0)),
                # Whole table; constant block index -> DMA'd once and kept resident.
                # Buffered(1): a block that never changes needs no double buffer.
                pl.BlockSpec((Kp, Dp), lambda i: (0, 0), pipeline_mode=pl.Buffered(1)),
            ],
            out_specs=pl.BlockSpec((tn, Dp), lambda i: (i, 0)),
            scratch_shapes=[pltpu.VMEM((tn, Dp), jnp.float32)],
        ),
        compiler_params=pltpu.CompilerParams(
            dimension_semantics=("parallel",),  # independent chunks -> megacore sharding
            vmem_limit_bytes=vmem_limit,
        ),
        cost_estimate=cost,
    )(idx2d, emb_p)

    return out[:N, :D].reshape(orig_shape + (D,))


class Code:
    """JAX/Pallas equivalent of the PyTorch `Code` module (forward pass only)."""

    def __init__(self, num_codes, code_dim, *, key):
        self.K = num_codes
        self.D = code_dim
        # Matches torch: self.embedding.weight.data.uniform_(-1/num_codes, 1/num_codes).
        # (padding_idx=-1 only zeroes gradients in torch; forward is a plain row lookup.)
        self.weight = jax.random.uniform(
            key, (num_codes, code_dim),
            minval=-1.0 / num_codes, maxval=1.0 / num_codes, dtype=jnp.float32)

    def __call__(self, indices=None):
        return embedding_lookup(self.weight, indices)


class EMACode(Code):
    """JAX/Pallas equivalent of the PyTorch `EMACode` module (forward pass only)."""

    def __init__(self, num_codes, code_dim, lamda=0.999, stop_gradient=False, *, key):
        super().__init__(num_codes, code_dim, key=key)
        self.lamda = lamda
        self.code_count = jnp.zeros((num_codes,), jnp.float32)  # EMA state; unused in forward
        self.update = not stop_gradient

    def __call__(self, indices=None, inputs=None):
        if inputs is not None:
            # TODO(synk): `vq_search` is not defined in the reference module; the
            # nearest-code-search path cannot be reproduced from the given spec.
            raise NotImplementedError("vq_search path is not defined in the reference spec")
        return embedding_lookup(self.weight, indices)

    # TODO(synk): update_code/_code_ema/_count_ema are training-time EMA state updates,
    # not part of the forward pass; intentionally not implemented as Pallas kernels.


if __name__ == "__main__":
    key = jax.random.PRNGKey(0)
    k_w1, k_i1, k_w2, k_i2, k_w3, k_i3 = jax.random.split(key, 6)

    # 1) Small single-chunk, single K-slice: K=16, D=128, batch=2, seq=8.
    code = EMACode(16, 128, key=k_w1)
    idx = jax.random.randint(k_i1, (2, 8), 0, 16, dtype=jnp.int32)
    out = jax.block_until_ready(code(indices=idx))
    ref = jnp.take(code.weight, idx.reshape(-1), axis=0).reshape(2, 8, 128)
    assert out.shape == (2, 8, 128)
    assert jnp.allclose(out, ref, atol=1e-6), "Pallas gather mismatch (small case)"

    # 2) Multi-chunk + K-tiled path: K=512 -> two 256-wide K slices, 1200 tokens, D=256.
    code2 = EMACode(512, 256, key=k_w2)
    idx2 = jax.random.randint(k_i2, (3, 400), 0, 512, dtype=jnp.int32)
    out2 = jax.block_until_ready(code2(indices=idx2))
    ref2 = jnp.take(code2.weight, idx2.reshape(-1), axis=0).reshape(3, 400, 256)
    assert jnp.allclose(out2, ref2, atol=1e-6), "Pallas gather mismatch (K-tiled case)"

    # 3) Non-128-multiple code_dim: D=96 padded to 128 lanes inside, sliced back outside.
    code3 = EMACode(32, 96, key=k_w3)
    idx3 = jax.random.randint(k_i3, (2, 50), 0, 32, dtype=jnp.int32)
    out3 = jax.block_until_ready(code3(indices=idx3))
    ref3 = jnp.take(code3.weight, idx3.reshape(-1), axis=0).reshape(2, 50, 96)
    assert jnp.allclose(out3, ref3, atol=1e-6), "Pallas gather mismatch (padded-D case)"

    print("KERNEL_OK")
</pallas_src>

<mosaic_0001>
module attributes {stable_mosaic.version = 11 : i64} {
  func.func @_gather_kernel(%arg0: i32, %arg1: memref<16x1xi32, #tpu.memory_space<vmem>>, %arg2: memref<16x128xf32, #tpu.memory_space<vmem>>, %arg3: memref<16x128xf32, #tpu.memory_space<vmem>>, %arg4: memref<16x128xf32, #tpu.memory_space<vmem>>) attributes {dimension_semantics = [#tpu.dimension_semantics<parallel>], iteration_bounds = array<i64: 1>, scalar_prefetch = 0 : i64, scratch_operands = 1 : i64, tpu.core_type = #tpu.core_type<tc>, window_params = [{transform_indices = @transform_0, window_bounds = array<i64: 16, 1>}, {pipeline_mode = #tpu.pipeline_mode<synchronous>, transform_indices = @transform_1, window_bounds = array<i64: 16, 128>}, {transform_indices = @transform_2, window_bounds = array<i64: 16, 128>}]} {
    %c0 = arith.constant 0 : index
    %c0_0 = arith.constant 0 : index
    %0 = vector.load %arg1[%c0, %c0_0] : memref<16x1xi32, #tpu.memory_space<vmem>>, vector<16x1xi32>
    %cst = arith.constant 0.000000e+00 : f32
    %1 = vector.broadcast %cst : f32 to vector<16x128xf32>
    %c0_1 = arith.constant 0 : index
    %c0_2 = arith.constant 0 : index
    %2 = vector.load %arg4[%c0_1, %c0_2] : memref<16x128xf32, #tpu.memory_space<vmem>>, vector<16x128xf32>
    tpu.vector_store %arg4[%c0_1, %c0_2], %1 {strides = array<i32>} : memref<16x128xf32, #tpu.memory_space<vmem>>, vector<16x128xf32>,
    %3 = tpu.iota {dimensions = array<i32: 1>} : vector<16x16xi32>
    %c0_i32 = arith.constant 0 : i32
    %4 = vector.broadcast %c0_i32 : i32 to vector<16x16xi32>
    %5 = arith.addi %4, %3 : vector<16x16xi32>
    %6 = vector.broadcast %0 : vector<16x1xi32> to vector<16x16xi32>
    %7 = arith.cmpi eq, %6, %5 : vector<16x16xi32>
    %8 = arith.extui %7 : vector<16x16xi1> to vector<16x16xi32>
    %9 = arith.sitofp %8 : vector<16x16xi32> to vector<16x16xf32>
    %c0_3 = arith.constant 0 : index
    %c0_4 = arith.constant 0 : index
    %10 = vector.load %arg4[%c0_3, %c0_4] : memref<16x128xf32, #tpu.memory_space<vmem>>, vector<16x128xf32>
    %c0_5 = arith.constant 0 : index
    %c0_6 = arith.constant 0 : index
    %11 = vector.load %arg2[%c0_5, %c0_6] : memref<16x128xf32, #tpu.memory_space<vmem>>, vector<16x128xf32>
    %cst_7 = arith.constant dense<0.000000e+00> : vector<16x128xf32>
    %12 = tpu.matmul %9, %11, %cst_7 {dimension_numbers = #tpu.dot_dimension_numbers<[1], [0], [0], [1], [0, 0, 1, 1], [], []>} : vector<16x16xf32>, vector<16x128xf32>, vector<16x128xf32> -> vector<16x128xf32>
    %13 = arith.addf %10, %12 : vector<16x128xf32>
    %c0_8 = arith.constant 0 : index
    %c0_9 = arith.constant 0 : index
    %14 = vector.load %arg4[%c0_8, %c0_9] : memref<16x128xf32, #tpu.memory_space<vmem>>, vector<16x128xf32>
    tpu.vector_store %arg4[%c0_8, %c0_9], %13 {strides = array<i32>} : memref<16x128xf32, #tpu.memory_space<vmem>>, vector<16x128xf32>,
    %c0_10 = arith.constant 0 : index
    %c0_11 = arith.constant 0 : index
    %15 = vector.load %arg4[%c0_10, %c0_11] : memref<16x128xf32, #tpu.memory_space<vmem>>, vector<16x128xf32>
    %c0_12 = arith.constant 0 : index
    %c0_13 = arith.constant 0 : index
    %16 = vector.load %arg3[%c0_12, %c0_13] : memref<16x128xf32, #tpu.memory_space<vmem>>, vector<16x128xf32>
    tpu.vector_store %arg3[%c0_12, %c0_13], %15 {strides = array<i32>} : memref<16x128xf32, #tpu.memory_space<vmem>>, vector<16x128xf32>,
    return
  }
  func.func @transform_0(%arg0: i32) -> (i32, i32) {
    %c0_i32 = arith.constant 0 : i32
    %c0_i32_0 = arith.constant 0 : i32
    return %arg0, %c0_i32 : i32, i32
  }
  func.func @transform_1(%arg0: i32) -> (i32, i32) {
    %c0_i32 = arith.constant 0 : i32
    %c0_i32_0 = arith.constant 0 : i32
    %c0_i32_1 = arith.constant 0 : i32
    return %c0_i32, %c0_i32_0 : i32, i32
  }
  func.func @transform_2(%arg0: i32) -> (i32, i32) {
    %c0_i32 = arith.constant 0 : i32
    %c0_i32_0 = arith.constant 0 : i32
    return %arg0, %c0_i32 : i32, i32
  }
}

</mosaic_0001>

<bundles_post_ra>
// kernel: tpu_custom_call.1
= control target key start
LH: loop header
LB: loop body
LE: loop exit
PB: predicated region body
PF: predicated region fallthrough
CT: control target
= control target key end

     0   :  { %s233_s0 = inlined_call_operand.vmem [shape: s32[16,1], index: 0, kind: input, shape index: {}]   ;;  %s234_s1 = inlined_call_operand.vmem [shape: f32[16,128], index: 1, kind: input, shape index: {}]   ;;  %s235_s2 = inlined_call_operand.hbm [shape: f32[16,128], index: 2, kind: output, shape index: {}]  }
   0x1   :  { %v12_v0 = vld [vmem:[%s233_s0] sm:$0xff] }
   0x2   :  { %7 = vsyncpa [#allocation4], 0  ;;  %v189_v1 = vmov 0   ;;  %v32_v2 = vld [vmem:[%s234_s1] sm:$0xff]  ;;  %v33_v3 = vld [vmem:[%s234_s1 + $0x8] sm:$0xff]  ;;  %v16_v6 = vlaneseq  ;;  %vm34_vm0 = vcmask 130048  }
   0x3   :  { %164 = vset.pattern.permute.xlu0 %v189_v1  ;;  %v155_v4 = vpack.c.bf16 %v33_v3, %v32_v2  ;;  %v13_v5 = vld [vmem:[%s233_s0 + $0x8] sm:$0xff]  ;;  %v190_v9 = vmov 0.0   ;;  %s191_s1 = smov [#allocation3]  }
   0x4   :  { %19 = vperm.xlu0 %164, %v12_v0   ;;  %v17_v7 = vand.u32 127, %v16_v6  ;;  %s129_s17 = sshll.u32 %s191_s1, 4  ;;  %s130_s17 = int_to_ptr.vmem [resolvable:$true] %s129_s17 }
   0x5   :  { %156 = vmatprep.subr.bf16.mxu0 %v155_v4  ;;  %s165_s0 = scalar_lea.vmem %s130_s17, 256  ;;  %p170_p1 = scmp.lt.s32.totalorder %s130_s17, %s130_s17 }
   0x6   :  { %158 = vmatpush3.bf16.msra.mxu0 %v155_v4  ;;  %p166_p0 = scmp.ne.s32.totalorder %s130_s17, %s165_s0  ;;  %p171_p2 = scmp.lt.s32.totalorder %s165_s0, %s165_s0 }
   0x8   :  { %22 = vperm.xlu0 %164, %v13_v5   ;;  %p172_p3 = por %p171_p2, %p170_p1 }
   0xa   :  { %p173_p4 = pnand %p172_p3, %p166_p0 }
  0x83   :  { %v20_v8 = vpop.permute.xlu0 %19 }
  0x84   :  { %vm24_vm1 = vcmp.eq.s32.totalorder %v20_v8, %v17_v7 }
  0x85   :  { %v140_v10 = vsel %vm24_vm1, 1.0, %v190_v9 }
  0x86   :  { %152 = vmatprep.mubr.msk.f32.mxu0 %vm34_vm0, %v140_v10 }
  0x87   :  { %v23_v11 = vpop.permute.xlu0 %22 }
  0x88   :  { %vm25_vm2 = vcmp.eq.s32.totalorder %v23_v11, %v17_v7 }
  0x89   :  { %v141_v12 = vsel %vm25_vm2, 1.0, %v190_v9 }
  0x8a   :  { %153 = vmatmul.mubr.msk.f32.vlgmr.msra.gmra.mrb[0].mxu0 %vm34_vm0, %v141_v12 }
 0x15d   :  { %v154_v13 = vpop.f32.mrb[0].mxu0 }
 0x15e   :  { %123 = vst [vmem:[#allocation3 + $0x8] sm:$0xff] %v154_v13  ;;  %v107_v14 = vpop.f32.mrb[1].mxu0 }
 0x15f   :  { %122 = vst [vmem:[#allocation3] sm:$0xff] %v107_v14 }
 0x160   :  { %176 = shalt.err (!%p173_p4)
}
 0x161   :  { %s177_s20 = scalar_lea.hbm %s235_s2, 256 }
 0x162   :  { %p178_p5 = scmp.ne.s32.totalorder %s235_s2, %s177_s20  ;;  %p181_p6 = scmp.lt.u32.totalorder %s177_s20, %s235_s2 }
 0x164   :  { %p183_p7 = pnand %p181_p6, %p178_p5 }
 0x166   :  { %186 = shalt.err (!%p183_p7)
}
 0x167   :  { %s192_s25 = smov 128   ;;  %s193_s26 = smov 8  }
 0x168   :  { %135 = dma.vmem_to_hbm [thread:$0]  %s130_s17, 256, %s235_s2, [#allocation4], %s192_s25, %s192_s25, %s193_s26  }
 0x169   :  { %187 = dma.done.wait [#allocation4], 256  }
 0x16a   :  { %188 = vsyncadd [#allocation4], 4294967040 }
 0x16b   :  { %139 = vsyncpa [#allocation4], 1 }

</bundles_post_ra>
